<compile_context>
chip_gen: v7x
topology: tpu7x:2x2x1
jax: 0.10.0
libtpu: 0.0.40
codegen_flags: <defaults>
</compile_context>

<pallas_src>
import functools

import jax
import jax.numpy as jnp
from jax.experimental import pallas as pl
from jax.experimental.pallas import tpu as pltpu

TILE_B = 512  # rows per grid step; >=512 reaches ~85% of HBM roofline


def _layernet_kernel(x_ref, w1_ref, b1_ref, w2_ref, b2_ref, w3_ref, b3_ref,
                     y_ref):
    """Fused forward: two sigmoid(Linear) hidden layers + final Linear."""
    # bf16 into the MXU, f32 accumulation; sigmoid/bias math stays f32.
    x = x_ref[...].astype(jnp.bfloat16)

    # hidden layer 1
    h = jnp.dot(x, w1_ref[...], preferred_element_type=jnp.float32)
    h = jax.nn.sigmoid(h + b1_ref[...])          # b1 (1, nh) broadcasts over rows

    # hidden layer 2
    h = jnp.dot(h.astype(jnp.bfloat16), w2_ref[...],
                preferred_element_type=jnp.float32)
    h = jax.nn.sigmoid(h + b2_ref[...])

    # output layer (no activation)
    y = jnp.dot(h.astype(jnp.bfloat16), w3_ref[...],
                preferred_element_type=jnp.float32)
    y = y + b3_ref[...]

    y_ref[...] = y.astype(y_ref.dtype)
    # TODO(synk): if profiling at large B shows vst.msk binding on v6e, pad the
    # output last dim to 128 and slice in the wrapper (lane-dense store).


@jax.jit
def layernet_forward(x, kparams):
    """x: (B, ...) flattened to (B, nx). kparams: kernel-layout params (see pack_params)."""
    B = x.shape[0]
    x2d = x.reshape(B, -1)                       # flatten(1)  (glue, plain JAX)
    nx = x2d.shape[1]
    ny = kparams["w3"].shape[1]

    tile_b = B if B <= TILE_B else TILE_B        # full-dim block when batch is small
    grid = (pl.cdiv(B, tile_b),)

    # Streamed: x and y, tiled over the batch axis.
    x_spec = pl.BlockSpec((tile_b, nx), lambda i: (i, 0))
    y_spec = pl.BlockSpec((tile_b, ny), lambda i: (i, 0))
    # Resident: weights/biases use a constant index_map -> stay in VMEM across steps.
    resident = lambda a: pl.BlockSpec(a.shape, lambda i: (0, 0))

    return pl.pallas_call(
        _layernet_kernel,
        out_shape=jax.ShapeDtypeStruct((B, ny), jnp.float32),
        grid=grid,
        in_specs=[
            x_spec,
            resident(kparams["w1"]), resident(kparams["b1"]),
            resident(kparams["w2"]), resident(kparams["b2"]),
            resident(kparams["w3"]), resident(kparams["b3"]),
        ],
        out_specs=y_spec,
        compiler_params=pltpu.CompilerParams(
            dimension_semantics=("parallel",)),   # batch tiles across TCs on v7x
    )(x2d, kparams["w1"], kparams["b1"], kparams["w2"], kparams["b2"],
      kparams["w3"], kparams["b3"])


def init_layernet_params(key, nx, nh, ny):
    """PyTorch-layout params: nn.Linear default init, W (out, in), b (out,), f32."""
    ks = jax.random.split(key, 6)

    def lin(kw, kb, fan_in, fan_out):
        bound = 1.0 / jnp.sqrt(fan_in)
        w = jax.random.uniform(kw, (fan_out, fan_in), jnp.float32, -bound, bound)
        b = jax.random.uniform(kb, (fan_out,), jnp.float32, -bound, bound)
        return w, b

    w1, b1 = lin(ks[0], ks[1], nx, nh)
    w2, b2 = lin(ks[2], ks[3], nh, nh)
    w3, b3 = lin(ks[4], ks[5], nh, ny)
    return {"w1": w1, "b1": b1, "w2": w2, "b2": b2, "w3": w3, "b3": b3}


def pack_params(params):
    """One-time conversion to kernel layout: W -> (in, out) bf16, b -> (1, n) f32."""
    return {
        "w1": params["w1"].T.astype(jnp.bfloat16),
        "w2": params["w2"].T.astype(jnp.bfloat16),
        "w3": params["w3"].T.astype(jnp.bfloat16),
        "b1": params["b1"].reshape(1, -1).astype(jnp.float32),
        "b2": params["b2"].reshape(1, -1).astype(jnp.float32),
        "b3": params["b3"].reshape(1, -1).astype(jnp.float32),
    }


def layernet_reference(x, params):
    """Pure-JAX f32 reference (PyTorch-layout params) for correctness check."""
    B = x.shape[0]
    h = x.reshape(B, -1)
    h = jax.nn.sigmoid(h @ params["w1"].T + params["b1"])
    h = jax.nn.sigmoid(h @ params["w2"].T + params["b2"])
    return h @ params["w3"].T + params["b3"]


if __name__ == "__main__":
    # LayerNet(nx=32, nh=32, ny=8, act=sigmoid, d=2)
    nx, nh, ny = 32, 32, 8

    key = jax.random.PRNGKey(0)
    kx, kx2, kp = jax.random.split(key, 3)
    params = init_layernet_params(kp, nx, nh, ny)
    kparams = pack_params(params)                 # one-time layout/dtype conversion

    # Small-batch check (single full-dim block, grid=(1,)).
    B = 8
    x = jax.random.normal(kx, (B, nx), jnp.float32)
    y = layernet_forward(x, kparams)
    jax.block_until_ready(y)
    y_ref = layernet_reference(x, params)
    assert y.shape == (B, ny)
    # bf16 MXU inputs -> allow ~1e-2 level deviation from the pure-f32 reference.
    assert jnp.allclose(y, y_ref, atol=5e-2, rtol=5e-2)

    # Larger-batch check exercising the batch grid (2 tiles of 512, pipelined).
    B2 = 1024
    x2 = jax.random.normal(kx2, (B2, nx), jnp.float32)
    y2 = layernet_forward(x2, kparams)
    jax.block_until_ready(y2)
    y2_ref = layernet_reference(x2, params)
    assert y2.shape == (B2, ny)
    assert jnp.allclose(y2, y2_ref, atol=5e-2, rtol=5e-2)

    print("KERNEL_OK")
</pallas_src>

<mosaic_0001>
module attributes {stable_mosaic.version = 11 : i64} {
  func.func @_layernet_kernel(%arg0: i32, %arg1: memref<8x32xf32, #tpu.memory_space<vmem>>, %arg2: memref<32x32xbf16, #tpu.memory_space<vmem>>, %arg3: memref<1x32xf32, #tpu.memory_space<vmem>>, %arg4: memref<32x32xbf16, #tpu.memory_space<vmem>>, %arg5: memref<1x32xf32, #tpu.memory_space<vmem>>, %arg6: memref<32x8xbf16, #tpu.memory_space<vmem>>, %arg7: memref<1x8xf32, #tpu.memory_space<vmem>>, %arg8: memref<8x8xf32, #tpu.memory_space<vmem>>) attributes {dimension_semantics = [#tpu.dimension_semantics<parallel>], iteration_bounds = array<i64: 1>, scalar_prefetch = 0 : i64, scratch_operands = 0 : i64, tpu.core_type = #tpu.core_type<tc>, window_params = [{transform_indices = @transform_0, window_bounds = array<i64: 8, 32>}, {pipeline_mode = #tpu.pipeline_mode<synchronous>, transform_indices = @transform_1, window_bounds = array<i64: 32, 32>}, {pipeline_mode = #tpu.pipeline_mode<synchronous>, transform_indices = @transform_2, window_bounds = array<i64: 1, 32>}, {pipeline_mode = #tpu.pipeline_mode<synchronous>, transform_indices = @transform_3, window_bounds = array<i64: 32, 32>}, {pipeline_mode = #tpu.pipeline_mode<synchronous>, transform_indices = @transform_4, window_bounds = array<i64: 1, 32>}, {pipeline_mode = #tpu.pipeline_mode<synchronous>, transform_indices = @transform_5, window_bounds = array<i64: 32, 8>}, {pipeline_mode = #tpu.pipeline_mode<synchronous>, transform_indices = @transform_6, window_bounds = array<i64: 1, 8>}, {transform_indices = @transform_7, window_bounds = array<i64: 8, 8>}]} {
    %c0 = arith.constant 0 : index
    %c0_0 = arith.constant 0 : index
    %0 = vector.load %arg1[%c0, %c0_0] : memref<8x32xf32, #tpu.memory_space<vmem>>, vector<8x32xf32>
    %1 = arith.truncf %0 : vector<8x32xf32> to vector<8x32xbf16>
    %c0_1 = arith.constant 0 : index
    %c0_2 = arith.constant 0 : index
    %2 = vector.load %arg2[%c0_1, %c0_2] : memref<32x32xbf16, #tpu.memory_space<vmem>>, vector<32x32xbf16>
    %cst = arith.constant dense<0.000000e+00> : vector<8x32xf32>
    %3 = tpu.matmul %1, %2, %cst {dimension_numbers = #tpu.dot_dimension_numbers<[1], [0], [0], [1], [0, 0, 1, 1], [], []>} : vector<8x32xbf16>, vector<32x32xbf16>, vector<8x32xf32> -> vector<8x32xf32>
    %c0_3 = arith.constant 0 : index
    %c0_4 = arith.constant 0 : index
    %4 = vector.load %arg3[%c0_3, %c0_4] : memref<1x32xf32, #tpu.memory_space<vmem>>, vector<1x32xf32>
    %5 = vector.broadcast %4 : vector<1x32xf32> to vector<8x32xf32>
    %6 = arith.addf %3, %5 : vector<8x32xf32>
    %7 = arith.negf %6 : vector<8x32xf32>
    %8 = math.exp %7 : vector<8x32xf32>
    %cst_5 = arith.constant 1.000000e+00 : f32
    %9 = vector.broadcast %cst_5 : f32 to vector<8x32xf32>
    %10 = arith.addf %9, %8 : vector<8x32xf32>
    %11 = arith.divf %9, %10 : vector<8x32xf32>
    %12 = arith.truncf %11 : vector<8x32xf32> to vector<8x32xbf16>
    %c0_6 = arith.constant 0 : index
    %c0_7 = arith.constant 0 : index
    %13 = vector.load %arg4[%c0_6, %c0_7] : memref<32x32xbf16, #tpu.memory_space<vmem>>, vector<32x32xbf16>
    %cst_8 = arith.constant dense<0.000000e+00> : vector<8x32xf32>
    %14 = tpu.matmul %12, %13, %cst_8 {dimension_numbers = #tpu.dot_dimension_numbers<[1], [0], [0], [1], [0, 0, 1, 1], [], []>} : vector<8x32xbf16>, vector<32x32xbf16>, vector<8x32xf32> -> vector<8x32xf32>
    %c0_9 = arith.constant 0 : index
    %c0_10 = arith.constant 0 : index
    %15 = vector.load %arg5[%c0_9, %c0_10] : memref<1x32xf32, #tpu.memory_space<vmem>>, vector<1x32xf32>
    %16 = vector.broadcast %15 : vector<1x32xf32> to vector<8x32xf32>
    %17 = arith.addf %14, %16 : vector<8x32xf32>
    %18 = arith.negf %17 : vector<8x32xf32>
    %19 = math.exp %18 : vector<8x32xf32>
    %cst_11 = arith.constant 1.000000e+00 : f32
    %20 = vector.broadcast %cst_11 : f32 to vector<8x32xf32>
    %21 = arith.addf %20, %19 : vector<8x32xf32>
    %22 = arith.divf %20, %21 : vector<8x32xf32>
    %23 = arith.truncf %22 : vector<8x32xf32> to vector<8x32xbf16>
    %c0_12 = arith.constant 0 : index
    %c0_13 = arith.constant 0 : index
    %24 = vector.load %arg6[%c0_12, %c0_13] : memref<32x8xbf16, #tpu.memory_space<vmem>>, vector<32x8xbf16>
    %cst_14 = arith.constant dense<0.000000e+00> : vector<8x8xf32>
    %25 = tpu.matmul %23, %24, %cst_14 {dimension_numbers = #tpu.dot_dimension_numbers<[1], [0], [0], [1], [0, 0, 1, 1], [], []>} : vector<8x32xbf16>, vector<32x8xbf16>, vector<8x8xf32> -> vector<8x8xf32>
    %c0_15 = arith.constant 0 : index
    %c0_16 = arith.constant 0 : index
    %26 = vector.load %arg7[%c0_15, %c0_16] : memref<1x8xf32, #tpu.memory_space<vmem>>, vector<1x8xf32>
    %27 = vector.broadcast %26 : vector<1x8xf32> to vector<8x8xf32>
    %28 = arith.addf %25, %27 : vector<8x8xf32>
    %c0_17 = arith.constant 0 : index
    %c0_18 = arith.constant 0 : index
    %29 = vector.load %arg8[%c0_17, %c0_18] : memref<8x8xf32, #tpu.memory_space<vmem>>, vector<8x8xf32>
    tpu.vector_store %arg8[%c0_17, %c0_18], %28 {strides = array<i32>} : memref<8x8xf32, #tpu.memory_space<vmem>>, vector<8x8xf32>,
    return
  }
  func.func @transform_0(%arg0: i32) -> (i32, i32) {
    %c0_i32 = arith.constant 0 : i32
    %c0_i32_0 = arith.constant 0 : i32
    return %arg0, %c0_i32 : i32, i32
  }
  func.func @transform_1(%arg0: i32) -> (i32, i32) {
    %c0_i32 = arith.constant 0 : i32
    %c0_i32_0 = arith.constant 0 : i32
    %c0_i32_1 = arith.constant 0 : i32
    return %c0_i32, %c0_i32_0 : i32, i32
  }
  func.func @transform_2(%arg0: i32) -> (i32, i32) {
    %c0_i32 = arith.constant 0 : i32
    %c0_i32_0 = arith.constant 0 : i32
    %c0_i32_1 = arith.constant 0 : i32
    return %c0_i32, %c0_i32_0 : i32, i32
  }
  func.func @transform_3(%arg0: i32) -> (i32, i32) {
    %c0_i32 = arith.constant 0 : i32
    %c0_i32_0 = arith.constant 0 : i32
    %c0_i32_1 = arith.constant 0 : i32
    return %c0_i32, %c0_i32_0 : i32, i32
  }
  func.func @transform_4(%arg0: i32) -> (i32, i32) {
    %c0_i32 = arith.constant 0 : i32
    %c0_i32_0 = arith.constant 0 : i32
    %c0_i32_1 = arith.constant 0 : i32
    return %c0_i32, %c0_i32_0 : i32, i32
  }
  func.func @transform_5(%arg0: i32) -> (i32, i32) {
    %c0_i32 = arith.constant 0 : i32
    %c0_i32_0 = arith.constant 0 : i32
    %c0_i32_1 = arith.constant 0 : i32
    return %c0_i32, %c0_i32_0 : i32, i32
  }
  func.func @transform_6(%arg0: i32) -> (i32, i32) {
    %c0_i32 = arith.constant 0 : i32
    %c0_i32_0 = arith.constant 0 : i32
    %c0_i32_1 = arith.constant 0 : i32
    return %c0_i32, %c0_i32_0 : i32, i32
  }
  func.func @transform_7(%arg0: i32) -> (i32, i32) {
    %c0_i32 = arith.constant 0 : i32
    %c0_i32_0 = arith.constant 0 : i32
    return %arg0, %c0_i32 : i32, i32
  }
}

</mosaic_0001>

<bundles_post_ra>
// kernel: layernet_forward.1
= control target key start
LH: loop header
LB: loop body
LE: loop exit
PB: predicated region body
PF: predicated region fallthrough
CT: control target
= control target key end

     0   :  { %12 = vsyncpa [#allocation3], 0  ;;  %s531_s0 = inlined_call_operand.hbm [shape: f32[8,32], index: 0, kind: input, shape index: {}]   ;;  %s532_s1 = inlined_call_operand.vmem [shape: bf16[32,32], index: 1, kind: input, shape index: {}]   ;;  %s533_s2 = inlined_call_operand.vmem [shape: f32[1,32], index: 2, kind: input, shape index: {}]   ;;  %s534_s3 = inlined_call_operand.vmem [shape: bf16[32,32], index: 3, kind: input, shape index: {}]   ;;  %s535_s4 = inlined_call_operand.vmem [shape: f32[1,32], index: 4, kind: input, shape index: {}]   ;;  %s536_s5 = inlined_call_operand.vmem [shape: bf16[32,8], index: 5, kind: input, shape index: {}]   ;;  %s537_s6 = inlined_call_operand.hbm [shape: f32[1,8], index: 6, kind: input, shape index: {}]   ;;  %s538_s7 = inlined_call_operand.hbm [shape: f32[8,8], index: 7, kind: output, shape index: {}]  }
   0x1   :  { %13 = vsyncpa [#allocation6], 0 }
   0x2   :  { %14 = vsyncpa [#allocation4], 0  ;;  %s423_s24 = smov [#allocation2]   ;;  %s424_s26 = smov [#allocation5]  }
   0x3   :  { %s21_s25 = sshll.u32 %s423_s24, 4  ;;  %s41_s27 = sshll.u32 %s424_s26, 4  ;;  %s22_s25 = int_to_ptr.vmem [resolvable:$true] %s21_s25  ;;  %s42_s27 = int_to_ptr.vmem [resolvable:$true] %s41_s27 }
   0x4   :  { %s351_s30 = scalar_lea.hbm %s531_s0, 128 }
   0x5   :  { %p352_p0 = scmp.ne.s32.totalorder %s531_s0, %s351_s30  ;;  %p355_p1 = scmp.lt.u32.totalorder %s351_s30, %s531_s0 }
   0x7   :  { %p357_p2 = pnand %p355_p1, %p352_p0 }
   0x9   :  { %360 = shalt.err (!%p357_p2)
}
   0xa   :  { %s361_s12 = scalar_lea.vmem %s22_s25, 128  ;;  %p366_p4 = scmp.lt.s32.totalorder %s22_s25, %s22_s25 }
   0xb   :  { %p362_p3 = scmp.ne.s32.totalorder %s22_s25, %s361_s12  ;;  %p367_p5 = scmp.lt.s32.totalorder %s361_s12, %s361_s12 }
   0xd   :  { %p368_p6 = por %p367_p5, %p366_p4 }
   0xf   :  { %p369_p7 = pnand %p368_p6, %p362_p3 }
  0x11   :  { %372 = shalt.err (!%p369_p7)
}
  0x12   :  { %24 = dma.hbm_to_vmem [thread:$0]  %s531_s0, 128, %s22_s25, [#allocation3]  }
  0x13   :  { %s373_s17 = scalar_lea.hbm %s537_s6, 16 }
  0x14   :  { %p374_p8 = scmp.ne.s32.totalorder %s537_s6, %s373_s17  ;;  %p377_p9 = scmp.lt.u32.totalorder %s373_s17, %s537_s6 }
  0x16   :  { %p379_p10 = pnand %p377_p9, %p374_p8 }
  0x18   :  { %382 = shalt.err (!%p379_p10)
}
  0x19   :  { %s383_s22 = scalar_lea.vmem %s42_s27, 16  ;;  %s387_s23 = scalar_lea.vmem %s42_s27, 32 }
  0x1a   :  { %p384_p11 = scmp.ne.s32.totalorder %s42_s27, %s383_s22  ;;  %p388_p12 = scmp.lt.s32.totalorder %s42_s27, %s42_s27 }
  0x1b   :  { %p389_p13 = scmp.lt.s32.totalorder %s387_s23, %s383_s22 }
  0x1d   :  { %p390_p0 = por %p389_p13, %p388_p12 }
  0x1f   :  { %p391_p1 = pnand %p390_p0, %p384_p11 }
  0x21   :  { %394 = shalt.err (!%p391_p1)
}
  0x22   :  { %44 = dma.hbm_to_vmem [thread:$0]  %s537_s6, 16, %s42_s27, [#allocation6]  }
  0x23   :  { %417 = dma.done.wait [#allocation3], 128  }
  0x24   :  { %418 = vsyncadd [#allocation3], 4294967168 }
  0x25   :  { %419 = dma.done.wait [#allocation6], 16  }
  0x26   :  { %420 = vsyncadd [#allocation6], 4294967280  ;;  %v425_v0 = vmov 0.0   ;;  %vm426_vm0 = vmmov 0   ;;  %v337_v1 = vld [vmem:[%s532_s1] sm:$0xff]   ;;  %v338_v2 = vld [vmem:[%s532_s1 + $0x8] sm:$0xff]  }
  0x27   :  { %308 = vmatprep.subr.bf16.mxu0 %v425_v0  ;;  %312 = vmatprep.mubr.msk.bf16.mxu0 %vm426_vm0, %v425_v0  ;;  %v52_v3 = vld [vmem:[#allocation2] sm:$0xff]  ;;  %vm77_vm1 = vcmask 261120   ;;  %v340_v6 = vld [vmem:[%s534_s3 + $0x8] sm:$0xff]   ;;  %vm267_vm2 = vcmask 64512  }
  0x28   :  { %316 = vmatprep.subr.bf16.mxu1 %v425_v0  ;;  %320 = vmatprep.mubr.msk.bf16.mxu1 %vm426_vm0, %v425_v0  ;;  %v53_v4 = vpack.c.bf16 %v52_v3, %v52_v3  ;;  %v339_v5 = vld [vmem:[%s534_s3] sm:$0xff]   ;;  %v342_v19 = vld [vmem:[%s536_s5 + $0x8] sm:$0xff]  }
  0x29   :  { %309 = vmatpush3.bf16.msra.mxu0 %v337_v1  ;;  %317 = vmatpush3.bf16.msra.mxu1 %v339_v5  ;;  %v285_v7 = vld [vmem:[%s533_s2] ss:$0 sm:$0xff]  ;;  %v295_v31 = vld [vmem:[#allocation5] ss:$0 sm:$0xff] }
  0x2a   :  { %310 = vmatprep.subr.bf16.mxu0 %v425_v0  ;;  %318 = vmatprep.subr.bf16.mxu1 %v425_v0  ;;  %v341_v18 = vld [vmem:[%s536_s5] sm:$0xff]   ;;  %s427_s5 = smov [#allocation7]  }
  0x2b   :  { %v290_v20 = vld [vmem:[%s535_s4] ss:$0 sm:$0xff]  ;;  %s275_s14 = sshll.u32 %s427_s5, 4  ;;  %s276_s14 = int_to_ptr.vmem [resolvable:$true] %s275_s14 }
  0x2c   :  { %s395_s4 = scalar_lea.vmem %s276_s14, 128  ;;  %p400_p3 = scmp.lt.s32.totalorder %s276_s14, %s276_s14 }
  0x2d   :  { %311 = vmatpush3.bf16.msra.mxu0 %v338_v2  ;;  %319 = vmatpush3.bf16.msra.mxu1 %v340_v6  ;;  %p396_p2 = scmp.ne.s32.totalorder %s276_s14, %s395_s4  ;;  %p401_p4 = scmp.lt.s32.totalorder %s395_s4, %s395_s4 }
  0x2e   :  { %324 = vmatprep.subr.bf16.mxu0 %v425_v0 }
  0x2f   :  { %p402_p5 = por %p401_p4, %p400_p3 }
  0x30   :  { %313 = vmatmul.mubr.msk.bf16.vlgmr.msra.gmra.mrb[0].mxu0 %vm77_vm1, %v53_v4 }
  0x31   :  { %328 = vmatprep.mubr.msk.bf16.mxu0 %vm426_vm0, %v425_v0  ;;  %325 = vmatpush3.bf16.msra.mxu0 %v341_v18  ;;  %p403_p6 = pnand %p402_p5, %p396_p2 }
  0x32   :  { %326 = vmatprep.subr.bf16.mxu0 %v425_v0 }
  0x35   :  { %327 = vmatpush3.bf16.msra.mxu0 %v342_v19 }
 0x103   :  { %v115_v8 = vpop.f32.mrb[0].mxu0 }
 0x104   :  { %v116_v9 = vadd.f32 %v285_v7, %v115_v8  ;;  %v314_v10 = vpop.f32.mrb[1].mxu0 }
 0x105   :  { %v118_v11 = vpop.f32.mrb[2].mxu0 }
 0x106   :  { %v289_v12 = vmul.f32 -1.442695, %v116_v9  ;;  %v315_v13 = vpop.f32.mrb[3].mxu0 }
 0x108   :  { %343 = vpow2.f32 %v289_v12 }
 0x112   :  { %v344_v14 = vpop.eup %343 }
 0x113   :  { %v124_v15 = vadd.f32 1.0, %v344_v14 }
 0x115   :  { %345 = vrcp.f32 %v124_v15 }
 0x11f   :  { %v346_v16 = vpop.eup %345 }
 0x120   :  { %v127_v17 = vpack.c.bf16 %v346_v16, %v346_v16 }
 0x122   :  { %321 = vmatmul.mubr.msk.bf16.vlgmr.msra.gmra.mrb[0].mxu1 %vm77_vm1, %v127_v17 }
 0x1f5   :  { %v188_v21 = vpop.f32.mrb[0].mxu1 }
 0x1f6   :  { %v189_v22 = vadd.f32 %v290_v20, %v188_v21  ;;  %v322_v23 = vpop.f32.mrb[1].mxu1 }
 0x1f7   :  { %v191_v24 = vpop.f32.mrb[2].mxu1 }
 0x1f8   :  { %v294_v25 = vmul.f32 -1.442695, %v189_v22  ;;  %v323_v26 = vpop.f32.mrb[3].mxu1 }
 0x1fa   :  { %347 = vpow2.f32 %v294_v25 }
 0x204   :  { %v348_v27 = vpop.eup %347 }
 0x205   :  { %v197_v28 = vadd.f32 1.0, %v348_v27 }
 0x207   :  { %349 = vrcp.f32 %v197_v28 }
 0x211   :  { %v350_v29 = vpop.eup %349 }
 0x212   :  { %v200_v30 = vpack.c.bf16 %v350_v29, %v350_v29 }
 0x214   :  { %329 = vmatmul.mubr.msk.bf16.vlgmr.msra.gmra.mrb[4].mxu0 %vm77_vm1, %v200_v30 }
 0x2e7   :  { %v261_v32 = vpop.f32.mrb[4].mxu0 }
 0x2e8   :  { %v262_v33 = vadd.f32 %v295_v31, %v261_v32  ;;  %v330_v34 = vpop.f32.mrb[5].mxu0 }
 0x2e9   :  { %v264_v35 = vpop.f32.mrb[6].mxu0 }
 0x2ea   :  { %v331_v36 = vpop.f32.mrb[7].mxu0  ;;  %268 = vst.msk [vmem:[#allocation7] sm:$0xff] %vm267_vm2, %v262_v33 }
 0x2eb   :  { %406 = shalt.err (!%p403_p6)
}
 0x2ec   :  { %s407_s17 = scalar_lea.hbm %s538_s7, 128 }
 0x2ed   :  { %p408_p7 = scmp.ne.s32.totalorder %s538_s7, %s407_s17  ;;  %p411_p8 = scmp.lt.u32.totalorder %s407_s17, %s538_s7 }
 0x2ef   :  { %p413_p9 = pnand %p411_p8, %p408_p7 }
 0x2f1   :  { %416 = shalt.err (!%p413_p9)
}
 0x2f2   :  { %278 = dma.vmem_to_hbm [thread:$0]  %s276_s14, 128, %s538_s7, [#allocation4]  }
 0x2f3   :  { %421 = dma.done.wait [#allocation4], 128  }
 0x2f4   :  { %422 = vsyncadd [#allocation4], 4294967168 }
 0x2f5   :  { %282 = vsyncpa [#allocation3], 1 }
 0x2f6   :  { %283 = vsyncpa [#allocation6], 1 }
 0x2f7   :  { %284 = vsyncpa [#allocation4], 1 }

</bundles_post_ra>
